<compile_context>
chip_gen: v7x
topology: tpu7x:2x2x1
jax: 0.10.0
libtpu: 0.0.40
codegen_flags: <defaults>
</compile_context>

<pallas_src>
import functools

import jax
import jax.numpy as jnp
from jax import lax
from jax.experimental import pallas as pl
from jax.experimental.pallas import tpu as pltpu


def _mha_kernel(x_ref, wqkv_ref, wo_ref, o_ref, *, head_num, head_dim):
    # grid = (B,); one batch element per step, all heads handled inside.
    E = head_num * head_dim

    x = x_ref[0]                    # (T, E)
    w_qkv = wqkv_ref[...]           # (E, 3E): [q | k | v] packed per head; scale in q
    w_out = wo_ref[...]             # (E, E): pre-transposed out-projection

    # One wide, lane-dense projection for q/k/v of every head.
    qkv = jnp.dot(x, w_qkv, preferred_element_type=jnp.float32)   # (T, 3E)

    ctx_parts = []
    for h in range(head_num):       # static unrolled loop over heads
        lo = h * head_dim
        q = qkv[:, lo:lo + head_dim]                    # (T, dd) — already * sqrt(dd)
        k = qkv[:, E + lo:E + lo + head_dim]            # (T, dd)
        v = qkv[:, 2 * E + lo:2 * E + lo + head_dim]    # (T, dd)

        # energy = q @ k^T without materializing a transpose.
        energy = lax.dot_general(
            q, k, (((1,), (1,)), ((), ())),
            preferred_element_type=jnp.float32)         # (T, T)

        # numerically-stable softmax over the last dim (matches torch.softmax)
        energy = energy - jnp.max(energy, axis=-1, keepdims=True)
        p = jnp.exp(energy)
        attn = p * pl.reciprocal(jnp.sum(p, axis=-1, keepdims=True), approx=False)

        ctx_parts.append(
            jnp.dot(attn, v, preferred_element_type=jnp.float32))  # (T, dd)

    # 'b h t d -> b t (h d)' packing, then one lane-dense output projection.
    ctx = jnp.concatenate(ctx_parts, axis=-1)                      # (T, E)
    out = jnp.dot(ctx, w_out, preferred_element_type=jnp.float32)  # (T, E)
    o_ref[0] = out.astype(o_ref.dtype)


def multi_head_attention(x, w_qkv, w_out, head_num):
    """x: (B, T, E); w_qkv: (3E, E); w_out: (E, E). Returns (B, T, E)."""
    B, T, E = x.shape
    dd = E // head_num
    scale = float(dd) ** 0.5        # module multiplies energy by sqrt(head_dim)

    # --- glue: reproduce 'b t (d k h) -> k b h t d' on the weight side -----
    # qkv output row o = d*3*H + k*H + h  ->  reshape rows as (dd, 3, H, E).
    w_r = w_qkv.reshape(dd, 3, head_num, E)

    def pack(part):
        # (dd, H, E) -> (E, H, dd) -> (E, H*dd); column index = h*dd + d
        return jnp.transpose(w_r[:, part], (2, 1, 0)).reshape(E, head_num * dd)

    wq = pack(0) * scale            # fold sqrt(dd) scale into Q weights
    wk = pack(1)
    wv = pack(2)
    w_big = jnp.concatenate([wq, wk, wv], axis=1)      # (E, 3E)

    # out proj: ctx packed as 'b t (h d)', so out = ctx @ W_out^T.
    wo = jnp.transpose(w_out)                          # (E, E)

    kernel = functools.partial(_mha_kernel, head_num=head_num, head_dim=dd)

    return pl.pallas_call(
        kernel,
        out_shape=jax.ShapeDtypeStruct((B, T, E), x.dtype),
        grid_spec=pltpu.PrefetchScalarGridSpec(
            num_scalar_prefetch=0,
            grid=(B,),
            in_specs=[
                pl.BlockSpec((1, T, E), lambda b: (b, 0, 0)),      # x
                pl.BlockSpec((E, 3 * E), lambda b: (0, 0)),        # fused qkv weights
                pl.BlockSpec((E, E), lambda b: (0, 0)),            # out-proj weights
            ],
            out_specs=pl.BlockSpec((1, T, E), lambda b: (b, 0, 0)),
        ),
        compiler_params=pltpu.CompilerParams(
            dimension_semantics=("parallel",)),
    )(x, w_big, wo)


def _reference(x, w_qkv, w_out, head_num):
    B, T, E = x.shape
    dd = E // head_num
    qkv = x @ w_qkv.T                                   # (B, T, 3E)
    qkv = qkv.reshape(B, T, dd, 3, head_num)            # (d k h) split
    qkv = jnp.transpose(qkv, (3, 0, 4, 1, 2))           # k b h t d
    q, k, v = qkv[0], qkv[1], qkv[2]
    energy = jnp.einsum("bhid,bhjd->bhij", q, k) * (dd ** 0.5)
    attn = jax.nn.softmax(energy, axis=-1)
    ctx = jnp.einsum("bhij,bhjd->bhid", attn, v)
    ctx = jnp.transpose(ctx, (0, 2, 1, 3)).reshape(B, T, E)
    return ctx @ w_out.T


if __name__ == "__main__":
    B, T, E, H = 2, 16, 32, 4

    key = jax.random.PRNGKey(0)
    kx, kqkv, kout = jax.random.split(key, 3)
    x = jax.random.normal(kx, (B, T, E), dtype=jnp.float32)
    # nn.Linear(E, 3E, bias=False).weight -> (3E, E); nn.Linear(E, E, bias=False).weight -> (E, E)
    w_qkv = jax.random.normal(kqkv, (3 * E, E), dtype=jnp.float32) * 0.05
    w_out = jax.random.normal(kout, (E, E), dtype=jnp.float32) * 0.05

    out = multi_head_attention(x, w_qkv, w_out, H)
    out = jax.block_until_ready(out)

    ref = _reference(x, w_qkv, w_out, H)
    assert out.shape == (B, T, E)
    assert jnp.allclose(out, ref, atol=1e-4, rtol=1e-4), (
        float(jnp.max(jnp.abs(out - ref))))

    print("KERNEL_OK")
</pallas_src>

<mosaic_0001>
module attributes {stable_mosaic.version = 11 : i64} {
  func.func @_mha_kernel(%arg0: i32, %arg1: memref<1x16x32xf32, #tpu.memory_space<vmem>>, %arg2: memref<32x96xf32, #tpu.memory_space<vmem>>, %arg3: memref<32x32xf32, #tpu.memory_space<vmem>>, %arg4: memref<1x16x32xf32, #tpu.memory_space<vmem>>) attributes {dimension_semantics = [#tpu.dimension_semantics<parallel>], iteration_bounds = array<i64: 2>, scalar_prefetch = 0 : i64, scratch_operands = 0 : i64, tpu.core_type = #tpu.core_type<tc>, window_params = [{transform_indices = @transform_0, window_bounds = array<i64: 1, 16, 32>}, {pipeline_mode = #tpu.pipeline_mode<synchronous>, transform_indices = @transform_1, window_bounds = array<i64: 32, 96>}, {pipeline_mode = #tpu.pipeline_mode<synchronous>, transform_indices = @transform_2, window_bounds = array<i64: 32, 32>}, {transform_indices = @transform_3, window_bounds = array<i64: 1, 16, 32>}]} {
    %c0 = arith.constant 0 : index
    %c0_0 = arith.constant 0 : index
    %c0_1 = arith.constant 0 : index
    %0 = vector.load %arg1[%c0, %c0_0, %c0_1] : memref<1x16x32xf32, #tpu.memory_space<vmem>>, vector<1x16x32xf32>
    %1 = vector.shape_cast %0 : vector<1x16x32xf32> to vector<16x32xf32>
    %c0_2 = arith.constant 0 : index
    %c0_3 = arith.constant 0 : index
    %2 = vector.load %arg2[%c0_2, %c0_3] : memref<32x96xf32, #tpu.memory_space<vmem>>, vector<32x96xf32>
    %c0_4 = arith.constant 0 : index
    %c0_5 = arith.constant 0 : index
    %3 = vector.load %arg3[%c0_4, %c0_5] : memref<32x32xf32, #tpu.memory_space<vmem>>, vector<32x32xf32>
    %cst = arith.constant dense<0.000000e+00> : vector<16x96xf32>
    %4 = tpu.matmul %1, %2, %cst {dimension_numbers = #tpu.dot_dimension_numbers<[1], [0], [0], [1], [0, 0, 1, 1], [], []>} : vector<16x32xf32>, vector<32x96xf32>, vector<16x96xf32> -> vector<16x96xf32>
    %5 = vector.extract_strided_slice %4 {offsets = [0, 0], sizes = [16, 8], strides = [1, 1]} : vector<16x96xf32> to vector<16x8xf32>
    %6 = vector.extract_strided_slice %4 {offsets = [0, 32], sizes = [16, 8], strides = [1, 1]} : vector<16x96xf32> to vector<16x8xf32>
    %7 = vector.extract_strided_slice %4 {offsets = [0, 64], sizes = [16, 8], strides = [1, 1]} : vector<16x96xf32> to vector<16x8xf32>
    %cst_6 = arith.constant dense<0.000000e+00> : vector<16x16xf32>
    %8 = tpu.matmul %5, %6, %cst_6 {dimension_numbers = #tpu.dot_dimension_numbers<[1], [1], [0], [0], [0, 0, 1, 0], [], []>} : vector<16x8xf32>, vector<16x8xf32>, vector<16x16xf32> -> vector<16x16xf32>
    %cst_7 = arith.constant dense<0xFF800000> : vector<16xf32>
    %9 = vector.multi_reduction <maximumf>, %8, %cst_7 [1] : vector<16x16xf32> to vector<16xf32>
    %10 = vector.shape_cast %9 : vector<16xf32> to vector<16x1xf32>
    %11 = vector.broadcast %10 : vector<16x1xf32> to vector<16x16xf32>
    %12 = arith.subf %8, %11 : vector<16x16xf32>
    %13 = math.exp %12 : vector<16x16xf32>
    %cst_8 = arith.constant dense<0.000000e+00> : vector<16xf32>
    %14 = vector.multi_reduction <add>, %13, %cst_8 [1] : vector<16x16xf32> to vector<16xf32>
    %15 = vector.shape_cast %14 : vector<16xf32> to vector<16x1xf32>
    %16 = tpu.reciprocal %15 : vector<16x1xf32> -> vector<16x1xf32>
    %17 = vector.broadcast %16 : vector<16x1xf32> to vector<16x16xf32>
    %18 = arith.mulf %13, %17 : vector<16x16xf32>
    %cst_9 = arith.constant dense<0.000000e+00> : vector<16x8xf32>
    %19 = tpu.matmul %18, %7, %cst_9 {dimension_numbers = #tpu.dot_dimension_numbers<[1], [0], [0], [1], [0, 0, 1, 1], [], []>} : vector<16x16xf32>, vector<16x8xf32>, vector<16x8xf32> -> vector<16x8xf32>
    %20 = vector.extract_strided_slice %4 {offsets = [0, 8], sizes = [16, 8], strides = [1, 1]} : vector<16x96xf32> to vector<16x8xf32>
    %21 = vector.extract_strided_slice %4 {offsets = [0, 40], sizes = [16, 8], strides = [1, 1]} : vector<16x96xf32> to vector<16x8xf32>
    %22 = vector.extract_strided_slice %4 {offsets = [0, 72], sizes = [16, 8], strides = [1, 1]} : vector<16x96xf32> to vector<16x8xf32>
    %cst_10 = arith.constant dense<0.000000e+00> : vector<16x16xf32>
    %23 = tpu.matmul %20, %21, %cst_10 {dimension_numbers = #tpu.dot_dimension_numbers<[1], [1], [0], [0], [0, 0, 1, 0], [], []>} : vector<16x8xf32>, vector<16x8xf32>, vector<16x16xf32> -> vector<16x16xf32>
    %cst_11 = arith.constant dense<0xFF800000> : vector<16xf32>
    %24 = vector.multi_reduction <maximumf>, %23, %cst_11 [1] : vector<16x16xf32> to vector<16xf32>
    %25 = vector.shape_cast %24 : vector<16xf32> to vector<16x1xf32>
    %26 = vector.broadcast %25 : vector<16x1xf32> to vector<16x16xf32>
    %27 = arith.subf %23, %26 : vector<16x16xf32>
    %28 = math.exp %27 : vector<16x16xf32>
    %cst_12 = arith.constant dense<0.000000e+00> : vector<16xf32>
    %29 = vector.multi_reduction <add>, %28, %cst_12 [1] : vector<16x16xf32> to vector<16xf32>
    %30 = vector.shape_cast %29 : vector<16xf32> to vector<16x1xf32>
    %31 = tpu.reciprocal %30 : vector<16x1xf32> -> vector<16x1xf32>
    %32 = vector.broadcast %31 : vector<16x1xf32> to vector<16x16xf32>
    %33 = arith.mulf %28, %32 : vector<16x16xf32>
    %cst_13 = arith.constant dense<0.000000e+00> : vector<16x8xf32>
    %34 = tpu.matmul %33, %22, %cst_13 {dimension_numbers = #tpu.dot_dimension_numbers<[1], [0], [0], [1], [0, 0, 1, 1], [], []>} : vector<16x16xf32>, vector<16x8xf32>, vector<16x8xf32> -> vector<16x8xf32>
    %35 = vector.extract_strided_slice %4 {offsets = [0, 16], sizes = [16, 8], strides = [1, 1]} : vector<16x96xf32> to vector<16x8xf32>
    %36 = vector.extract_strided_slice %4 {offsets = [0, 48], sizes = [16, 8], strides = [1, 1]} : vector<16x96xf32> to vector<16x8xf32>
    %37 = vector.extract_strided_slice %4 {offsets = [0, 80], sizes = [16, 8], strides = [1, 1]} : vector<16x96xf32> to vector<16x8xf32>
    %cst_14 = arith.constant dense<0.000000e+00> : vector<16x16xf32>
    %38 = tpu.matmul %35, %36, %cst_14 {dimension_numbers = #tpu.dot_dimension_numbers<[1], [1], [0], [0], [0, 0, 1, 0], [], []>} : vector<16x8xf32>, vector<16x8xf32>, vector<16x16xf32> -> vector<16x16xf32>
    %cst_15 = arith.constant dense<0xFF800000> : vector<16xf32>
    %39 = vector.multi_reduction <maximumf>, %38, %cst_15 [1] : vector<16x16xf32> to vector<16xf32>
    %40 = vector.shape_cast %39 : vector<16xf32> to vector<16x1xf32>
    %41 = vector.broadcast %40 : vector<16x1xf32> to vector<16x16xf32>
    %42 = arith.subf %38, %41 : vector<16x16xf32>
    %43 = math.exp %42 : vector<16x16xf32>
    %cst_16 = arith.constant dense<0.000000e+00> : vector<16xf32>
    %44 = vector.multi_reduction <add>, %43, %cst_16 [1] : vector<16x16xf32> to vector<16xf32>
    %45 = vector.shape_cast %44 : vector<16xf32> to vector<16x1xf32>
    %46 = tpu.reciprocal %45 : vector<16x1xf32> -> vector<16x1xf32>
    %47 = vector.broadcast %46 : vector<16x1xf32> to vector<16x16xf32>
    %48 = arith.mulf %43, %47 : vector<16x16xf32>
    %cst_17 = arith.constant dense<0.000000e+00> : vector<16x8xf32>
    %49 = tpu.matmul %48, %37, %cst_17 {dimension_numbers = #tpu.dot_dimension_numbers<[1], [0], [0], [1], [0, 0, 1, 1], [], []>} : vector<16x16xf32>, vector<16x8xf32>, vector<16x8xf32> -> vector<16x8xf32>
    %50 = vector.extract_strided_slice %4 {offsets = [0, 24], sizes = [16, 8], strides = [1, 1]} : vector<16x96xf32> to vector<16x8xf32>
    %51 = vector.extract_strided_slice %4 {offsets = [0, 56], sizes = [16, 8], strides = [1, 1]} : vector<16x96xf32> to vector<16x8xf32>
    %52 = vector.extract_strided_slice %4 {offsets = [0, 88], sizes = [16, 8], strides = [1, 1]} : vector<16x96xf32> to vector<16x8xf32>
    %cst_18 = arith.constant dense<0.000000e+00> : vector<16x16xf32>
    %53 = tpu.matmul %50, %51, %cst_18 {dimension_numbers = #tpu.dot_dimension_numbers<[1], [1], [0], [0], [0, 0, 1, 0], [], []>} : vector<16x8xf32>, vector<16x8xf32>, vector<16x16xf32> -> vector<16x16xf32>
    %cst_19 = arith.constant dense<0xFF800000> : vector<16xf32>
    %54 = vector.multi_reduction <maximumf>, %53, %cst_19 [1] : vector<16x16xf32> to vector<16xf32>
    %55 = vector.shape_cast %54 : vector<16xf32> to vector<16x1xf32>
    %56 = vector.broadcast %55 : vector<16x1xf32> to vector<16x16xf32>
    %57 = arith.subf %53, %56 : vector<16x16xf32>
    %58 = math.exp %57 : vector<16x16xf32>
    %cst_20 = arith.constant dense<0.000000e+00> : vector<16xf32>
    %59 = vector.multi_reduction <add>, %58, %cst_20 [1] : vector<16x16xf32> to vector<16xf32>
    %60 = vector.shape_cast %59 : vector<16xf32> to vector<16x1xf32>
    %61 = tpu.reciprocal %60 : vector<16x1xf32> -> vector<16x1xf32>
    %62 = vector.broadcast %61 : vector<16x1xf32> to vector<16x16xf32>
    %63 = arith.mulf %58, %62 : vector<16x16xf32>
    %cst_21 = arith.constant dense<0.000000e+00> : vector<16x8xf32>
    %64 = tpu.matmul %63, %52, %cst_21 {dimension_numbers = #tpu.dot_dimension_numbers<[1], [0], [0], [1], [0, 0, 1, 1], [], []>} : vector<16x16xf32>, vector<16x8xf32>, vector<16x8xf32> -> vector<16x8xf32>
    %65 = tpu.concatenate %19, %34, %49, %64 in 1 : vector<16x8xf32>, vector<16x8xf32>, vector<16x8xf32>, vector<16x8xf32> -> vector<16x32xf32>
    %cst_22 = arith.constant dense<0.000000e+00> : vector<16x32xf32>
    %66 = tpu.matmul %65, %3, %cst_22 {dimension_numbers = #tpu.dot_dimension_numbers<[1], [0], [0], [1], [0, 0, 1, 1], [], []>} : vector<16x32xf32>, vector<32x32xf32>, vector<16x32xf32> -> vector<16x32xf32>
    %c0_23 = arith.constant 0 : index
    %c0_24 = arith.constant 0 : index
    %c0_25 = arith.constant 0 : index
    %67 = vector.load %arg4[%c0_23, %c0_24, %c0_25] : memref<1x16x32xf32, #tpu.memory_space<vmem>>, vector<1x16x32xf32>
    %68 = vector.shape_cast %67 : vector<1x16x32xf32> to vector<16x32xf32>
    %69 = vector.shape_cast %66 : vector<16x32xf32> to vector<1x16x32xf32>
    tpu.vector_store %arg4[%c0_23, %c0_24, %c0_25], %69 {strides = array<i32>} : memref<1x16x32xf32, #tpu.memory_space<vmem>>, vector<1x16x32xf32>,
    return
  }
  func.func @transform_0(%arg0: i32) -> (i32, i32, i32) {
    %c0_i32 = arith.constant 0 : i32
    %c0_i32_0 = arith.constant 0 : i32
    %c0_i32_1 = arith.constant 0 : i32
    return %arg0, %c0_i32, %c0_i32_0 : i32, i32, i32
  }
  func.func @transform_1(%arg0: i32) -> (i32, i32) {
    %c0_i32 = arith.constant 0 : i32
    %c0_i32_0 = arith.constant 0 : i32
    %c0_i32_1 = arith.constant 0 : i32
    return %c0_i32, %c0_i32_0 : i32, i32
  }
  func.func @transform_2(%arg0: i32) -> (i32, i32) {
    %c0_i32 = arith.constant 0 : i32
    %c0_i32_0 = arith.constant 0 : i32
    %c0_i32_1 = arith.constant 0 : i32
    return %c0_i32, %c0_i32_0 : i32, i32
  }
  func.func @transform_3(%arg0: i32) -> (i32, i32, i32) {
    %c0_i32 = arith.constant 0 : i32
    %c0_i32_0 = arith.constant 0 : i32
    %c0_i32_1 = arith.constant 0 : i32
    return %arg0, %c0_i32, %c0_i32_0 : i32, i32, i32
  }
}

</mosaic_0001>

<bundles_post_ra>
// kernel: tpu_custom_call.1
= control target key start
LH: loop header
LB: loop body
LE: loop exit
PB: predicated region body
PF: predicated region fallthrough
CT: control target
= control target key end

     0   :  { %8 = vsyncpa [#allocation3], 0  ;;  %s2261_s0 = inlined_call_operand.hbm [shape: f32[2,16,32], index: 0, kind: input, shape index: {}]   ;;  %s2262_s1 = inlined_call_operand.hbm [shape: f32[32,96], index: 1, kind: input, shape index: {}]   ;;  %s2263_s2 = inlined_call_operand.hbm [shape: f32[32,32], index: 2, kind: input, shape index: {}]   ;;  %s2264_s3 = inlined_call_operand.hbm [shape: f32[2,16,32], index: 3, kind: output, shape index: {}]  }
   0x1   :  { %10 = vsyncpa [#allocation3 + $0x1], 0 }
   0x2   :  { %11 = vsyncpa [#allocation6], 0 }
   0x3   :  { %12 = vsyncpa [#allocation4], 0 }
   0x4   :  { %14 = vsyncpa [#allocation4 + $0x1], 0  ;;  %s1911_s12 = smov 0   ;;  %s1913_s13 = smov 0  }
   0x5   :  { %s1915_s14 = smov 0   ;;  %s1917_s15 = smov 0  }
   0x6 LB: > { %s1932_s16 = sadd.s32 4294967295, %s1868_s15   ;;  %s1330_s17 = sadd.s32 4294967294, %s1868_s15   ;;  %s1868_s15 = sphi %s1917_s15, %s2286_s15   ;;  %s1864_s14 = sphi %s1915_s14, %s2285_s14   ;;  %s1860_s13 = sphi %s1913_s13, %s2284_s13   ;;  %s1856_s12 = sphi %s1911_s12, %s2283_s12  }
   0x7   : > { %p40_p0 = scmp.ne.s32.totalorder %s1860_s13, %s1856_s12  ;;  %p2265_p1 = scmp.eq.s32.totalorder %s1932_s16, 0 }
   0x8   : > { %p112_p3 = scmp.eq.s32.totalorder %s1330_s17, 1  ;;  %p1331_p5 = scmp.ge.s32.totalorder %s1868_s15, 1 }
   0x9   : > { %p1941_p4 = por %p2265_p1, %p40_p0  ;;  %p119_p7 = scmp.lt.s32.totalorder %s1868_s15, 3 }
   0xa   : > { %p1946_p6 = por %p112_p3, %p40_p0  ;;  %s1870_s21 = smov [#allocation5]  }
   0xb   : > { %s2268_s18 = scalar_select %p1941_p4, 1, 0 }
   0xc   : > { %s2269_s19 = scalar_select %p1946_p6, 1, 0 }
   0xd   : > { %p1951_p8 = pnand %p1331_p5, %p119_p7  ;;  %s131_s22 = sshll.u32 %s1870_s21, 4  ;;  %s1955_s22 = int_to_ptr.vmem [resolvable:$true] %s131_s22 }
   0xe   : > { %s1871_s24 = smov [#allocation7]   ;;  %s1712_s28 = scalar_lea.hbm %s2262_s1, 512 }
   0xf   : > { %p1568_p9 = pneg %p1951_p8  ;;  %s144_s25 = sshll.u32 %s1871_s24, 4  ;;  %s1966_s25 = int_to_ptr.vmem [resolvable:$true] %s144_s25 }
  0x10   : > { %p1713_p12 = scmp.ne.s32.totalorder %s2262_s1, %s1712_s28  ;;  %p1719_p5 = scmp.lt.u32.totalorder %s1712_s28, %s2262_s1 }
  0x11   : > { %p1962_p11 = pnand %p1568_p9, %p2265_p1 }
  0x13   : > { %p1714_p13 = pneg %p1962_p11 }
  0x15   : > { %p1715_p0 = pnand %p1714_p13, %p1713_p12 }
  0x17   : > { %p1716_p3 = pneg %p1715_p0 }
  0x19   : > { %p1721_p7 = pnand %p1719_p5, %p1716_p3 }
  0x1b   : > { %1724 = shalt.err (!%p1721_p7)
}
  0x1c   : > { %s1725_s6 = scalar_lea.vmem %s1955_s22, 512  ;;  %p1733_p2 = scmp.lt.s32.totalorder %s1955_s22, %s1955_s22 }
  0x1d   : > { %p1726_p9 = scmp.ne.s32.totalorder %s1955_s22, %s1725_s6  ;;  %p1734_p12 = scmp.lt.s32.totalorder %s1725_s6, %s1725_s6 }
  0x1f   : > { %p1728_p10 = pnand %p1726_p9, %p1714_p13  ;;  %p1735_p0 = por %p1734_p12, %p1733_p2 }
  0x21   : > { %p1729_p1 = pneg %p1728_p10 }
  0x23   : > { %p1736_p6 = pnand %p1735_p0, %p1729_p1 }
  0x25   : > { %1739 = shalt.err (!%p1736_p6)
}
  0x26   : > { %s1872_s7 = smov 128   ;;  %s1873_s8 = smov 8  }
  0x27   : > { %1571 = dma.hbm_to_vmem [thread:$0]  (!%p1962_p11), %s2262_s1, 512, %s1955_s22, [#allocation6], %s1872_s7, %s1872_s7, %s1873_s8  }
  0x28   : > { %s1740_s21 = scalar_lea.hbm %s2263_s2, 512 }
  0x29   : > { %p1741_p1 = scmp.ne.s32.totalorder %s2263_s2, %s1740_s21  ;;  %p1747_p10 = scmp.lt.u32.totalorder %s1740_s21, %s2263_s2 }
  0x2b   : > { %p1743_p2 = pnand %p1741_p1, %p1714_p13 }
  0x2d   : > { %p1744_p6 = pneg %p1743_p2 }
  0x2f   : > { %p1749_p3 = pnand %p1747_p10, %p1744_p6 }
  0x31   : > { %1752 = shalt.err (!%p1749_p3)
}
  0x32   : > { %s1753_s22 = scalar_lea.vmem %s1966_s25, 512  ;;  %p1761_p12 = scmp.lt.s32.totalorder %s1966_s25, %s1966_s25 }
  0x33   : > { %p1754_p5 = scmp.ne.s32.totalorder %s1966_s25, %s1753_s22  ;;  %p1762_p0 = scmp.lt.s32.totalorder %s1753_s22, %s1753_s22 }
  0x35   : > { %p1756_p7 = pnand %p1754_p5, %p1714_p13  ;;  %p1763_p1 = por %p1762_p0, %p1761_p12 }
  0x37   : > { %p1757_p9 = pneg %p1756_p7 }
  0x39   : > { %p1764_p2 = pnand %p1763_p1, %p1757_p9 }
  0x3b   : > { %1767 = shalt.err (!%p1764_p2)
}
  0x3c   : > { %1574 = dma.hbm_to_vmem [thread:$0]  (!%p1962_p11), %s2263_s2, 512, %s1966_s25, [#allocation6], %s1872_s7, %s1872_s7, %s1873_s8  }
  0x3d   : > { %s2027_s23 = sadd.s32 1, %s1868_s15   ;;  %s27_s4 = sadd.s32 1, %s1864_s14 }
  0x3e   : > { %s24_s5 = ssub.s32 %s1868_s15, %s2027_s23  ;;  %p34_p13 = scmp.ne.s32.totalorder %s1864_s14, %s1860_s13 }
  0x3f   : > { %p25_p6 = scmp.eq.s32.totalorder %s24_s5, 0  ;;  %p35_p10 = scmp.eq.s32.totalorder %s1868_s15, 0 }
  0x40   : > { %p2272_p3 = scmp.eq.s32.totalorder %s1932_s16, 1  ;;  %p1585_p7 = scmp.lt.s32.totalorder %s1868_s15, 2 }
  0x41   : > { %s2043_s9 = scalar_select %p25_p6, %s1864_s14, %s27_s4  }
  0x42   : > { %p2037_p5 = por %p2272_p3, %p34_p13  ;;  %p36_p9 = por %p35_p10, %p34_p13 }
  0x43   : > { %s158_s10 = sand.u32 1, %s1864_s14   ;;  %s1376_s25 = sshll.u32 %s1868_s15, 8 }
  0x44   : > { %s2273_s6 = scalar_select %p2037_p5, 1, 0 }
  0x45   : > { %s1335_s11 = sshll.u32 %s158_s10, 4  ;;  %s2050_s24 = scalar_lea.hbm %s2261_s0, %s1376_s25 }
  0x46   : > { %s162_s26 = scalar_lea.vmem [#allocation2], %s1335_s11  ;;  %p2054_p11 = pnand %p1585_p7, %p36_p9 }
  0x47   : > { %s169_s27 = sshll.u32 %s162_s26, 4  ;;  %s2058_s22 = scalar_lea.sflag [#allocation3], %s158_s10  ;;  %s2052_s27 = int_to_ptr.vmem [resolvable:$true] %s169_s27 }
  0x48   : > { %s1768_s29 = scalar_lea.hbm %s2050_s24, 256  ;;  %p1770_p0 = pneg %p2054_p11 }
  0x49   : > { %p1769_p12 = scmp.ne.s32.totalorder %s2050_s24, %s1768_s29  ;;  %s1773_s5 = scalar_lea.hbm %s2261_s0, 512 }
  0x4a   : > { %p1774_p13 = scmp.lt.u32.totalorder %s2050_s24, %s2261_s0  ;;  %p1775_p6 = scmp.lt.u32.totalorder %s1773_s5, %s1768_s29 }
  0x4b   : > { %p1771_p1 = pnand %p1770_p0, %p1769_p12  ;;  %p1777_p3 = scmp.lt.u32.totalorder %s1768_s29, %s2050_s24 }
  0x4c   : > { %p1776_p10 = por %p1775_p6, %p1774_p13 }
  0x4d   : > { %p1772_p2 = pneg %p1771_p1 }
  0x4e   : > { %p1778_p7 = por %p1777_p3, %p1776_p10 }
  0x50   : > { %p1779_p9 = pnand %p1778_p7, %p1772_p2 }
  0x52   : > { %1782 = shalt.err (!%p1779_p9)
}
  0x53   : > { %s1783_s10 = scalar_lea.vmem %s2052_s27, 256  ;;  %s1874_s17 = smov [#allocation2]  }
  0x54   : > { %p1784_p12 = scmp.ne.s32.totalorder %s2052_s27, %s1783_s10  ;;  %s1788_s21 = sshll.u32 %s1874_s17, 4  ;;  %s1789_s21 = int_to_ptr.vmem [resolvable:$false] %s1788_s21 }
  0x55   : > { %s1790_s26 = scalar_lea.vmem %s1789_s21, 512  ;;  %p1791_p4 = scmp.lt.s32.totalorder %s2052_s27, %s1789_s21 }
  0x56   : > { %p1786_p1 = pnand %p1784_p12, %p1770_p0  ;;  %p1792_p13 = scmp.lt.s32.totalorder %s1790_s26, %s1783_s10 }
  0x58   : > { %p1787_p5 = pneg %p1786_p1  ;;  %p1793_p6 = por %p1792_p13, %p1791_p4 }
  0x5a   : > { %p1794_p10 = pnand %p1793_p6, %p1787_p5 }
  0x5c   : > { %1797 = shalt.err (!%p1794_p10)
}
  0x5d   : > { %1578 = dma.hbm_to_vmem [thread:$0]  (!%p2054_p11), %s2050_s24, 256, %s2052_s27, %s2058_s22, %s1872_s7, %s1872_s7, %s1873_s8  }
  0x5e   : > { %181 = sbr.rel (%p1951_p8) target bundleno = 3161 (0xc59), region = 32  ;;  %s2092_s29 = sand.u32 (!%p1951_p8), 1, %s1860_s13  }
  0x5f   : > { %s1339_s30 = sshll.u32 (!%p1951_p8), %s2092_s29, 4  ;;  %s184_s4 = scalar_lea.sflag (!%p1951_p8), [#allocation3], %s2092_s29 }
  0x60   : > { %s187_s28 = scalar_lea.vmem (!%p1951_p8), [#allocation2], %s1339_s30  ;;  %p2275_p4 = scmp.ne.s32.totalorder (!%p1951_p8), %s2268_s18, 0 }
  0x65   : > { %1843 = dma.done.wait (%p2275_p4), %s184_s4, 256  }
  0x66   : > { %1845 = vsyncadd (%p2275_p4), %s184_s4, 4294967040  ;;  %p2276_p5 = scmp.eq.s32.totalorder %s1932_s16, 0 }
  0x68   : > { %1847 = dma.done.wait (%p2276_p5), [#allocation6], 1024   ;;  %p2277_p8 = pmov %p2276_p5 }
  0x69   : > { %vm228_vm0 = vcmask 261120   ;;  %v220_v0 = vld [vmem:[#allocation5] sm:$0xff]  ;;  %v221_v1 = vld [vmem:[#allocation5 + $0x8] sm:$0xff]  ;;  %v222_v2 = vld [vmem:[#allocation5 + $0x10] sm:$0xff]  ;;  %vm316_vm1 = vcmask 64512   ;;  %s1875_s18 = smov 96  }
  0x6a   : > { %1849 = vsyncadd (%p2277_p8), [#allocation6], 4294966272  ;;  %v1500_v3 = vpack.c.bf16 %v221_v1, %v220_v0  ;;  %v223_v4 = vld [vmem:[#allocation5 + $0x18] sm:$0xff]  ;;  %v218_v5 = vld [vmem:[%s187_s28] sm:$0xff]  ;;  %vm400_vm3 = vcmask 130048   ;;  %s1876_s20 = smov 64  }
  0x6b   : > { %v1504_v6 = vpack.c.bf16 %v223_v4, %v222_v2  ;;  %1430 = vmatprep.mubr.msk.f32.mxu0 %vm228_vm0, %v218_v5  ;;  %v219_v7 = vld [vmem:[%s187_s28 + $0x8] sm:$0xff]  ;;  %vm2121_vm2 = vmpackc.low %vm316_vm1, %vm316_vm1  ;;  %s1877_s7 = smov 88   ;;  %s1878_s8 = smov 120   ;;  %vm1138_vm4 = vcmask 195584  }
  0x6c   : > { %1501 = vmatprep.subr.bf16.mxu0 %v1500_v3  ;;  %s1879_s24 = smov 56   ;;  %s1880_s27 = smov 80  }
  0x6d   : > { %1503 = vmatpush3.bf16.msra.mxu0 %v1500_v3  ;;  %s1881_s22 = smov 112   ;;  %s1882_s5 = smov 72  }
  0x6e   : > { %1505 = vmatprep.subr.bf16.mxu0 %v1504_v6  ;;  %s1883_s11 = smov 104   ;;  %s1884_s25 = smov 48  }
  0x6f   : > { %s1885_s10 = smov 8   ;;  %s1886_s17 = smov 40  }
  0x70   : > { %s1887_s21 = smov 16   ;;  %s1888_s26 = smov 24  }
  0x71   : > { %1507 = vmatpush3.bf16.msra.mxu0 %v1504_v6  ;;  %s217_s4 = scalar_lea.vmem [#allocation8], %s1339_s30  ;;  %p2280_p0 = scmp.ne.s32.totalorder %s2273_s6, 0 }
  0x72   : > { %s1238_s28 = sshll.u32 %s217_s4, 4  ;;  %s2209_s28 = int_to_ptr.vmem [resolvable:$true] %s1238_s28 }
  0x73   : > { %s1798_s30 = scalar_lea.vmem %s2209_s28, 256 }
  0x74   : > { %1431 = vmatmul.mubr.msk.f32.vlgmr.msra.gmra.mrb[0].mxu0 %vm228_vm0, %v219_v7  ;;  %p1799_p11 = scmp.ne.s32.totalorder %s2209_s28, %s1798_s30 }
  0x76   : > { %p1800_p2 = pnand %p1799_p11, %p2280_p0 }
  0x78   : > { %p1801_p3 = pneg %p1800_p2 }
 0x147   : > { %v2108_v8 = vpop.f32.mrb[0].mxu0 }
 0x148   : > { %v2110_v9 = vpop.f32.mrb[1].mxu0 }
 0x149   : > { %1437 = vmatprep.mubr.msk.f32.mxu1 %vm316_vm1, %v2110_v9  ;;  %v2116_v10 = vpack.i.bf16 %v2108_v8, %v2110_v9 }
 0x14b   : > { %1641 = vrot.lane.b32.xlu0 %v2116_v10, %s1875_s18  ;;  %s1377_s18 = sshll.u32 %s1932_s16, 8  ;;  %s1889_s16 = smov [#allocation8]  }
 0x1bd   : > { %v1642_v11 = vpop.permute.xlu0 %1641 }
 0x1be   : > { %v1644_v12 = vunpack.i.h.bf16 %v1642_v11  ;;  %v1643_v13 = vunpack.i.l.bf16 %v1642_v11 }
 0x1c0   : > { %v1508_v15 = vpack.c.bf16 %v1644_v12, %v1643_v13 }
 0x1c2   : > { %1510 = vmatprep.subr.msk.bf16.mxu1 %vm2121_vm2, %v1508_v15 }
 0x1c3   : > { %1513 = vmatpush3.bf16.xpose.msk.msra.mxu1 %vm2121_vm2, %v1508_v15 }
 0x1ca   : > { %1438 = vmatmul.mubr.msk.f32.vlgmr.msra.gmra.mrb[0].mxu1 %vm316_vm1, %v2108_v8 }
 0x29d   : > { %v1439_v16 = vpop.f32.mrb[0].mxu1 }
 0x29e   : > { %v391_v17 = vpop.f32.mrb[1].mxu1  ;;  %v404_v18 = vsel %vm400_vm3, %v1439_v16, -inf }
 0x29f   : > { %405 = vmax.xlane.f32.xlu1 %v404_v18  ;;  %v401_v19 = vsel %vm400_vm3, %v391_v17, -inf }
 0x2a0   : > { %402 = vmax.xlane.f32.xlu0 %v401_v19 }
 0x2b0   : > { %1646 = vrot.lane.b32.xlu1 %v2116_v10, %s1876_s20 }
 0x2b4   : > { %1651 = vrot.lane.b32.xlu1 %v2116_v10, %s1877_s7 }
 0x2b6   : > { %512 = vrot.lane.b32.xlu0 %v2108_v8, %s1878_s8 }
 0x32c   : > { %v406_v20 = vpop.xlane.xlu1 %405 }
 0x32d   : > { %v408_v21 = vsub.f32 %v1439_v16, %v406_v20  ;;  %v403_v22 = vpop.xlane.xlu0 %402 }
 0x32e   : > { %v407_v23 = vsub.f32 %v391_v17, %v403_v22 }
 0x32f   : > { %v411_v24 = vmul.f32 1.442695, %v408_v21 }
 0x330   : > { %v409_v25 = vmul.f32 1.442695, %v407_v23  ;;  %v1647_v26 = vpop.permute.xlu1 %1646 }
 0x331   : > { %1680 = vpow2.f32 %v411_v24  ;;  %v1649_v27 = vunpack.i.h.bf16 %v1647_v26  ;;  %v1648_v28 = vunpack.i.l.bf16 %v1647_v26  ;;  %v513_v45 = vpop.permute.xlu0 %512 }
 0x332   : > { %1682 = vpow2.f32 %v409_v25 }
 0x333   : > { %v1514_v29 = vpack.c.bf16 %v1649_v27, %v1648_v28 }
 0x334   : > { %v1652_v30 = vpop.permute.xlu1 %1651 }
 0x335   : > { %v1654_v31 = vunpack.i.h.bf16 %v1652_v30  ;;  %v1653_v32 = vunpack.i.l.bf16 %v1652_v30  ;;  %1515 = vmatprep.subr.bf16.mxu1 %v1514_v29 }
 0x336   : > { %1517 = vmatpush3.bf16.msra.mxu1 %v1514_v29 }
 0x337   : > { %v1518_v33 = vpack.c.bf16 %v1654_v31, %v1653_v32 }
 0x339   : > { %1520 = vmatprep.subr.msk.bf16.mxu1 %vm2121_vm2, %v1518_v33 }
 0x33b   : > { %v1681_v34 = vpop.eup %1680 }
 0x33c   : > { %v416_v35 = vsel %vm400_vm3, %v1681_v34, 0.0  ;;  %v1683_v36 = vpop.eup %1682 }
 0x33d   : > { %417 = vadd.xlane.f32.xlu1 %v416_v35  ;;  %v413_v37 = vsel %vm400_vm3, %v1683_v36, 0.0 }
 0x341   : > { %414 = vadd.xlane.f32.xlu1 %v413_v37 }
 0x352   : > { %510 = vrot.lane.b32.xlu1 %v2110_v9, %s1878_s8  ;;  %s2214_s8 = scalar_lea.hbm %s2264_s3, %s1377_s18 }
 0x3ca   : > { %v418_v38 = vpop.xlane.xlu1 %417 }
 0x3cb   : > { %1684 = vrcp.f32 %v418_v38 }
 0x3ce   : > { %v415_v39 = vpop.xlane.xlu1 %414 }
 0x3cf   : > { %1686 = vrcp.f32 %v415_v39 }
 0x3d2   : > { %v511_v44 = vpop.permute.xlu1 %510 }
 0x3d5   : > { %v1685_v40 = vpop.eup %1684 }
 0x3d6   : > { %v422_v43 = vmul.f32 %v1685_v40, %v1681_v34 }
 0x3d9   : > { %v1687_v41 = vpop.eup %1686 }
 0x3da   : > { %v421_v42 = vmul.f32 %v1687_v41, %v1683_v36 }
 0x3dc   : > { %1444 = vmatprep.mubr.msk.f32.mxu1 %vm400_vm3, %v421_v42 }
 0x3dd   : > { %1445 = vmatmul.mubr.msk.f32.vlgmr.msra.gmra.mrb[2].mxu1 %vm400_vm3, %v422_v43 }
 0x3de   : > { %1523 = vmatpush3.bf16.xpose.msk.msra.mxu1 %vm2121_vm2, %v1518_v33  ;;  %1451 = vmatprep.mubr.msk.f32.mxu1 %vm316_vm1, %v511_v44 }
 0x3e5   : > { %1452 = vmatmul.mubr.msk.f32.vlgmr.msra.gmra.mrb[4].mxu1 %vm316_vm1, %v513_v45 }
 0x4b0   : > { %v2147_v46 = vpop.f32.mrb[2].mxu1 }
 0x4b1   : > { %v2149_v47 = vpop.f32.mrb[3].mxu1 }
 0x4b8   : > { %v1453_v48 = vpop.f32.mrb[4].mxu1 }
 0x4b9   : > { %v592_v49 = vpop.f32.mrb[5].mxu1  ;;  %v604_v50 = vsel %vm400_vm3, %v1453_v48, -inf }
 0x4ba   : > { %605 = vmax.xlane.f32.xlu0 %v604_v50  ;;  %v601_v51 = vsel %vm400_vm3, %v592_v49, -inf }
 0x4bb   : > { %602 = vmax.xlane.f32.xlu1 %v601_v51 }
 0x4cc   : > { %1656 = vrot.lane.b32.xlu1 %v2116_v10, %s1879_s24  ;;  %s1225_s24 = scalar_lea.sflag [#allocation4], %s2092_s29 }
 0x4d0   : > { %1661 = vrot.lane.b32.xlu0 %v2116_v10, %s1880_s27  ;;  %710 = vrot.lane.b32.xlu1 %v2110_v9, %s1881_s22  ;;  %s1802_s27 = sshll.u32 %s1889_s16, 4  ;;  %s1803_s27 = int_to_ptr.vmem [resolvable:$false] %s1802_s27 }
 0x4d1   : > { %p1805_p7 = scmp.lt.s32.totalorder %s2209_s28, %s1803_s27 }
 0x547   : > { %v606_v52 = vpop.xlane.xlu0 %605 }
 0x548   : > { %v608_v53 = vsub.f32 %v1453_v48, %v606_v52  ;;  %v603_v54 = vpop.xlane.xlu1 %602 }
 0x549   : > { %v607_v55 = vsub.f32 %v592_v49, %v603_v54 }
 0x54a   : > { %v611_v56 = vmul.f32 1.442695, %v608_v53 }
 0x54b   : > { %v609_v57 = vmul.f32 1.442695, %v607_v55  ;;  %v1662_v58 = vpop.permute.xlu0 %1661 }
 0x54c   : > { %1688 = vpow2.f32 %v611_v56  ;;  %v1657_v59 = vpop.permute.xlu1 %1656  ;;  %v1664_v60 = vunpack.i.h.bf16 %v1662_v58  ;;  %v1663_v61 = vunpack.i.l.bf16 %v1662_v58 }
 0x54d   : > { %v1659_v62 = vunpack.i.h.bf16 %v1657_v59  ;;  %v1658_v63 = vunpack.i.l.bf16 %v1657_v59  ;;  %1690 = vpow2.f32 %v609_v57 }
 0x54e   : > { %v1528_v1 = vpack.c.bf16 %v1664_v60, %v1663_v61 }
 0x54f   : > { %v1524_v0 = vpack.c.bf16 %v1659_v62, %v1658_v63 }
 0x550   : > { %v711_v6 = vpop.permute.xlu1 %710 }
 0x551   : > { %1525 = vmatprep.subr.bf16.mxu0 %v1524_v0 }
 0x552   : > { %1527 = vmatpush3.bf16.msra.mxu0 %v1524_v0 }
 0x553   : > { %1530 = vmatprep.subr.msk.bf16.mxu0 %vm2121_vm2, %v1528_v1 }
 0x556   : > { %v1689_v2 = vpop.eup %1688 }
 0x557   : > { %v616_v3 = vsel %vm400_vm3, %v1689_v2, 0.0  ;;  %v1691_v4 = vpop.eup %1690 }
 0x558   : > { %617 = vadd.xlane.f32.xlu1 %v616_v3  ;;  %v613_v5 = vsel %vm400_vm3, %v1691_v4, 0.0 }
 0x55c   : > { %614 = vadd.xlane.f32.xlu1 %v613_v5 }
 0x56d   : > { %712 = vrot.lane.b32.xlu1 %v2108_v8, %s1881_s22  ;;  %s1804_s22 = scalar_lea.vmem %s1803_s27, 512 }
 0x56e   : > { %p1806_p9 = scmp.lt.s32.totalorder %s1804_s22, %s1798_s30 }
 0x570   : > { %p1807_p12 = por %p1806_p9, %p1805_p7 }
 0x572   : > { %p1808_p1 = pnand %p1807_p12, %p1801_p3 }
 0x5e5   : > { %v618_v7 = vpop.xlane.xlu1 %617 }
 0x5e6   : > { %1692 = vrcp.f32 %v618_v7 }
 0x5e9   : > { %v615_v11 = vpop.xlane.xlu1 %614 }
 0x5ea   : > { %1694 = vrcp.f32 %v615_v11 }
 0x5ed   : > { %v713_v17 = vpop.permute.xlu1 %712 }
 0x5f0   : > { %v1693_v12 = vpop.eup %1692 }
 0x5f1   : > { %v622_v16 = vmul.f32 %v1693_v12, %v1689_v2 }
 0x5f4   : > { %v1695_v13 = vpop.eup %1694 }
 0x5f5   : > { %v621_v15 = vmul.f32 %v1695_v13, %v1691_v4 }
 0x5f7   : > { %1458 = vmatprep.mubr.msk.f32.mxu0 %vm400_vm3, %v621_v15  ;;  %v225_v15 = vld [vmem:[#allocation7 + $0x8] sm:$0xff] }
 0x5f8   : > { %1459 = vmatmul.mubr.msk.f32.vlgmr.msra.gmra.mrb[2].mxu0 %vm400_vm3, %v622_v16  ;;  %v226_v16 = vld [vmem:[#allocation7 + $0x10] sm:$0xff] }
 0x5f9   : > { %1533 = vmatpush3.bf16.xpose.msk.msra.mxu0 %vm2121_vm2, %v1528_v1  ;;  %1465 = vmatprep.mubr.msk.f32.mxu0 %vm316_vm1, %v711_v6 }
 0x600   : > { %1466 = vmatmul.mubr.msk.f32.vlgmr.msra.gmra.mrb[4].mxu0 %vm316_vm1, %v713_v17 }
 0x6cb   : > { %v2167_v18 = vpop.f32.mrb[2].mxu0 }
 0x6cc   : > { %v2169_v19 = vpop.f32.mrb[3].mxu0 }
 0x6d3   : > { %v1467_v20 = vpop.f32.mrb[4].mxu0 }
 0x6d4   : > { %v792_v21 = vpop.f32.mrb[5].mxu0  ;;  %v804_v22 = vsel %vm400_vm3, %v1467_v20, -inf }
 0x6d5   : > { %805 = vmax.xlane.f32.xlu0 %v804_v22  ;;  %v801_v23 = vsel %vm400_vm3, %v792_v21, -inf }
 0x6d6   : > { %802 = vmax.xlane.f32.xlu1 %v801_v23 }
 0x762   : > { %v806_v24 = vpop.xlane.xlu0 %805 }
 0x763   : > { %v808_v25 = vsub.f32 %v1467_v20, %v806_v24  ;;  %v803_v26 = vpop.xlane.xlu1 %802 }
 0x764   : > { %v807_v27 = vsub.f32 %v792_v21, %v803_v26 }
 0x765   : > { %v811_v28 = vmul.f32 1.442695, %v808_v25 }
 0x766   : > { %v809_v29 = vmul.f32 1.442695, %v807_v27 }
 0x767   : > { %1696 = vpow2.f32 %v811_v28 }
 0x768   : > { %1698 = vpow2.f32 %v809_v29 }
 0x771   : > { %v1697_v30 = vpop.eup %1696 }
 0x772   : > { %v1699_v31 = vpop.eup %1698  ;;  %v816_v32 = vsel %vm400_vm3, %v1697_v30, 0.0 }
 0x773   : > { %817 = vadd.xlane.f32.xlu1 %v816_v32  ;;  %v813_v33 = vsel %vm400_vm3, %v1699_v31, 0.0 }
 0x774   : > { %814 = vadd.xlane.f32.xlu0 %v813_v33 }
 0x784   : > { %1671 = vrot.lane.b32.xlu1 %v2116_v10, %s1882_s5 }
 0x788   : > { %910 = vrot.lane.b32.xlu1 %v2110_v9, %s1883_s11 }
 0x78a   : > { %1666 = vrot.lane.b32.xlu0 %v2116_v10, %s1884_s25 }
 0x78e   : > { %912 = vrot.lane.b32.xlu0 %v2108_v8, %s1883_s11 }
 0x800   : > { %v818_v34 = vpop.xlane.xlu1 %817 }
 0x801   : > { %1700 = vrcp.f32 %v818_v34  ;;  %v815_v35 = vpop.xlane.xlu0 %814 }
 0x802   : > { %1702 = vrcp.f32 %v815_v35 }
 0x804   : > { %v1672_v36 = vpop.permute.xlu1 %1671 }
 0x805   : > { %v1667_v37 = vpop.permute.xlu0 %1666  ;;  %v1674_v38 = vunpack.i.h.bf16 %v1672_v36  ;;  %v1673_v39 = vunpack.i.l.bf16 %v1672_v36 }
 0x806   : > { %v1669_v40 = vunpack.i.h.bf16 %v1667_v37  ;;  %v1668_v41 = vunpack.i.l.bf16 %v1667_v37 }
 0x807   : > { %v1538_v43 = vpack.c.bf16 %v1674_v38, %v1673_v39 }
 0x808   : > { %v1534_v42 = vpack.c.bf16 %v1669_v40, %v1668_v41  ;;  %v911_v48 = vpop.permute.xlu1 %910 }
 0x809   : > { %v913_v49 = vpop.permute.xlu0 %912 }
 0x80a   : > { %1535 = vmatprep.subr.bf16.mxu1 %v1534_v42 }
 0x80b   : > { %v1701_v44 = vpop.eup %1700  ;;  %1537 = vmatpush3.bf16.msra.mxu1 %v1534_v42 }
 0x80c   : > { %v1703_v9 = vpop.eup %1702  ;;  %1540 = vmatprep.subr.msk.bf16.mxu1 %vm2121_vm2, %v1538_v43  ;;  %v822_v45 = vmul.f32 %v1701_v44, %v1697_v30 }
 0x80d   : > { %v821_v8 = vmul.f32 %v1703_v9, %v1699_v31 }
 0x80f   : > { %1472 = vmatprep.mubr.msk.f32.mxu1 %vm400_vm3, %v821_v8 }
 0x810   : > { %1473 = vmatmul.mubr.msk.f32.vlgmr.msra.gmra.mrb[6].mxu1 %vm400_vm3, %v822_v45 }
 0x811   : > { %1479 = vmatprep.mubr.msk.f32.mxu1 %vm316_vm1, %v911_v48 }
 0x814   : > { %1543 = vmatpush3.bf16.xpose.msk.msra.mxu1 %vm2121_vm2, %v1538_v43 }
 0x81b   : > { %1480 = vmatmul.mubr.msk.f32.vlgmr.msra.gmra.mrb[8].mxu1 %vm316_vm1, %v913_v49 }
 0x8e3   : > { %v1474_v50 = vpop.f32.mrb[6].mxu1 }
 0x8e4   : > { %v901_v51 = vpop.f32.mrb[7].mxu1 }
 0x8ee   : > { %v1481_v52 = vpop.f32.mrb[8].mxu1 }
 0x8ef   : > { %v992_v53 = vpop.f32.mrb[9].mxu1  ;;  %v1004_v54 = vsel %vm400_vm3, %v1481_v52, -inf }
 0x8f0   : > { %1005 = vmax.xlane.f32.xlu0 %v1004_v54  ;;  %v1001_v55 = vsel %vm400_vm3, %v992_v53, -inf }
 0x8f1   : > { %1002 = vmax.xlane.f32.xlu1 %v1001_v55 }
 0x97d   : > { %v1006_v56 = vpop.xlane.xlu0 %1005 }
 0x97e   : > { %v1008_v57 = vsub.f32 %v1481_v52, %v1006_v56  ;;  %v1003_v58 = vpop.xlane.xlu1 %1002 }
 0x97f   : > { %v1007_v59 = vsub.f32 %v992_v53, %v1003_v58 }
 0x980   : > { %v1011_v60 = vmul.f32 1.442695, %v1008_v57 }
 0x981   : > { %v1009_v14 = vmul.f32 1.442695, %v1007_v59 }
 0x982   : > { %1704 = vpow2.f32 %v1011_v60 }
 0x983   : > { %1706 = vpow2.f32 %v1009_v14 }
 0x98c   : > { %v1705_v61 = vpop.eup %1704 }
 0x98d   : > { %v1707_v62 = vpop.eup %1706  ;;  %v1016_v63 = vsel %vm400_vm3, %v1705_v61, 0.0 }
 0x98e   : > { %1017 = vadd.xlane.f32.xlu1 %v1016_v63  ;;  %v1013_v0 = vsel %vm400_vm3, %v1707_v62, 0.0 }
 0x98f   : > { %1014 = vadd.xlane.f32.xlu0 %v1013_v0 }
 0x99f   : > { %1112 = vrot.lane.b32.xlu1 %v2169_v19, %s1885_s10 }
 0x9a3   : > { %1114 = vrot.lane.b32.xlu1 %v2167_v18, %s1885_s10  ;;  %v227_v18 = vld [vmem:[#allocation7 + $0x18] sm:$0xff] }
 0x9a4   : > { %v1552_v19 = vpack.c.bf16 %v227_v18, %v226_v16 }
 0x9a5   : > { %1676 = vrot.lane.b32.xlu0 %v2116_v10, %s1886_s17  ;;  %v224_v10 = vld [vmem:[#allocation7] sm:$0xff] }
 0x9a6   : > { %v1548_v17 = vpack.c.bf16 %v225_v15, %v224_v10 }
 0x9a7   : > { %1122 = vrot.lane.b32.xlu1 %v1474_v50, %s1887_s21 }
 0x9a9   : > { %1120 = vrot.lane.b32.xlu0 %v901_v51, %s1887_s21 }
 0xa1b   : > { %v1018_v1 = vpop.xlane.xlu1 %1017 }
 0xa1c   : > { %1708 = vrcp.f32 %v1018_v1  ;;  %v1015_v2 = vpop.xlane.xlu0 %1014 }
 0xa1d   : > { %1710 = vrcp.f32 %v1015_v2 }
 0xa1f   : > { %v1113_v22 = vpop.permute.xlu1 %1112 }
 0xa20   : > { %v1677_v3 = vpop.permute.xlu0 %1676  ;;  %v1134_v26 = vsel %vm316_vm1, %v2149_v47, %v1113_v22 }
 0xa21   : > { %v1679_v4 = vunpack.i.h.bf16 %v1677_v3  ;;  %v1678_v5 = vunpack.i.l.bf16 %v1677_v3 }
 0xa23   : > { %v1544_v6 = vpack.c.bf16 %v1679_v4, %v1678_v5  ;;  %v1115_v23 = vpop.permute.xlu1 %1114 }
 0xa24   : > { %v1121_v25 = vpop.permute.xlu0 %1120  ;;  %v1135_v28 = vsel %vm316_vm1, %v2147_v46, %v1115_v23 }
 0xa25   : > { %1545 = vmatprep.subr.bf16.mxu0 %v1544_v6  ;;  %v1136_v29 = vsel %vm400_vm3, %v1134_v26, %v1121_v25 }
 0xa26   : > { %v1709_v7 = vpop.eup %1708  ;;  %1547 = vmatpush3.bf16.msra.mxu0 %v1544_v6 }
 0xa27   : > { %v1711_v11 = vpop.eup %1710  ;;  %v1022_v13 = vmul.f32 %v1709_v7, %v1705_v61  ;;  %1549 = vmatprep.subr.bf16.mxu0 %v1548_v17  ;;  %v1123_v24 = vpop.permute.xlu1 %1122 }
 0xa28   : > { %v1021_v12 = vmul.f32 %v1711_v11, %v1707_v62  ;;  %v1137_v31 = vsel %vm400_vm3, %v1135_v28, %v1123_v24 }
 0xa2a   : > { %1486 = vmatprep.mubr.msk.f32.mxu0 %vm400_vm3, %v1021_v12 }
 0xa2b   : > { %1487 = vmatmul.mubr.msk.f32.vlgmr.msra.gmra.mrb[6].mxu0 %vm400_vm3, %v1022_v13 }
 0xa2c   : > { %1551 = vmatpush3.bf16.msra.mxu0 %v1548_v17 }
 0xa2d   : > { %1553 = vmatprep.subr.bf16.mxu0 %v1552_v19 }
 0xa30   : > { %1555 = vmatpush3.bf16.msra.mxu0 %v1552_v19 }
 0xafe   : > { %v1488_v20 = vpop.f32.mrb[6].mxu0 }
 0xaff   : > { %1130 = vrot.lane.b32.xlu1 %v1488_v20, %s1888_s26  ;;  %v1101_v21 = vpop.f32.mrb[7].mxu0 }
 0xb00   : > { %1128 = vrot.lane.b32.xlu0 %v1101_v21, %s1888_s26 }
 0xb71   : > { %v1131_v27 = vpop.permute.xlu1 %1130 }
 0xb72   : > { %v1129_v30 = vpop.permute.xlu0 %1128  ;;  %v1140_v33 = vsel %vm1138_vm4, %v1137_v31, %v1131_v27 }
 0xb73   : > { %v1139_v32 = vsel %vm1138_vm4, %v1136_v29, %v1129_v30 }
 0xb74   : > { %1497 = vmatprep.mubr.msk.f32.mxu0 %vm228_vm0, %v1139_v32 }
 0xb75   : > { %1498 = vmatmul.mubr.msk.f32.vlgmr.msra.gmra.mrb[8].mxu0 %vm228_vm0, %v1140_v33 }
 0xc48   : > { %v1499_v46 = vpop.f32.mrb[8].mxu0 }
 0xc49   : > { %1223 = vst.msk [vmem:[%s217_s4 + $0x8] sm:$0xff] %vm228_vm0, %v1499_v46  ;;  %v1213_v47 = vpop.f32.mrb[9].mxu0 }
 0xc4a   : > { %1222 = vst.msk [vmem:[%s217_s4] sm:$0xff] %vm228_vm0, %v1213_v47 }
 0xc4b   : > { %1811 = shalt.err (!%p1808_p1)
}
 0xc4c   : > { %s1812_s5 = scalar_lea.hbm %s2214_s8, 256  ;;  %s1816_s17 = scalar_lea.hbm %s2264_s3, 512 }
 0xc4d   : > { %p1813_p13 = scmp.ne.s32.totalorder %s2214_s8, %s1812_s5  ;;  %p1817_p4 = scmp.lt.u32.totalorder %s2214_s8, %s2264_s3 }
 0xc4e   : > { %p1818_p5 = scmp.lt.u32.totalorder %s1816_s17, %s1812_s5  ;;  %p1820_p11 = scmp.lt.u32.totalorder %s1812_s5, %s2214_s8 }
 0xc4f   : > { %p1814_p6 = pnand %p1813_p13, %p2280_p0 }
 0xc50   : > { %p1819_p8 = por %p1818_p5, %p1817_p4 }
 0xc51   : > { %p1815_p10 = pneg %p1814_p6 }
 0xc52   : > { %p1821_p2 = por %p1820_p11, %p1819_p8 }
 0xc54   : > { %p1822_p3 = pnand %p1821_p2, %p1815_p10 }
 0xc56   : > { %1825 = shalt.err (!%p1822_p3)
}
 0xc57   : > { %s1890_s4 = smov 128  }
 0xc58   : > { %1566 = dma.vmem_to_hbm [thread:$0]  (%p2280_p0), %s2209_s28, 256, %s2214_s8, %s1225_s24, %s1890_s4, %s1890_s4, %s1885_s10  }
 0xc59 PF: > { %s1253_s18 = sand.u32 1, %s1856_s12   ;;  %p2281_p7 = scmp.ne.s32.totalorder %s2269_s19, 0 }
 0xc5a   : > { %p2282_p9 = scmp.ge.s32.totalorder %s1868_s15, 2  ;;  %s1254_s20 = scalar_lea.sflag [#allocation4], %s1253_s18 }
 0xc5c   : > { %p1580_p12 = pnand %p2282_p9, %p2281_p7 }
 0xc5e   : > { %1851 = dma.done.wait (!%p1580_p12), %s1254_s20, 256  }
 0xc5f   : > { %1853 = vsyncadd (!%p1580_p12), %s1254_s20, 4294967040  ;;  %p17_p1 = scmp.ge.s32.totalorder %s2027_s23, 4   ;;  %s2283_s12 = smov %s1860_s13 }
 0xc60   : > { %s2284_s13 = smov %s1864_s14  ;;  %s2285_s14 = smov %s2043_s9 }
 0xc61   : > { %s2286_s15 = smov %s2027_s23  ;;  %19 = sbr.rel (!%p17_p1) target bundleno = 6 (0x6), region = 85 }
 0xc68   :  { %1259 = vsyncpa [#allocation3], 1 }
 0xc69   :  { %1261 = vsyncpa [#allocation3 + $0x1], 1 }
 0xc6a   :  { %1262 = vsyncpa [#allocation6], 1 }
 0xc6b   :  { %1263 = vsyncpa [#allocation4], 1 }
 0xc6c   :  { %1265 = vsyncpa [#allocation4 + $0x1], 1 }

</bundles_post_ra>
